<compile_context>
chip_gen: v5e
topology: v5e:2x2
jax: 0.10.0
libtpu: 0.0.40
codegen_flags: <defaults>
</compile_context>

<pallas_src>
import jax
import jax.numpy as jnp
import numpy as np
from jax.experimental import pallas as pl
from jax.experimental.pallas import tpu as pltpu


def _round_up(a, b):
    return (a + b - 1) // b * b


def _attention_kernel(gt_ref, xbt_ref, wg_ref, wx_ref, b_ref, wpsi_ref,
                      bpsi_ref, out_ref):
    """One lane-tile of `tm` coarse spatial positions (lane axis = positions).

    gt_ref  : (F_g,   tm)   coarse gating signal, channels on sublanes
    xbt_ref : (4*F_l, tm)   2x2 fine-res block per coarse position; rows
                            [0:F_l) are the stride-2 sample used by W_x
    wg_ref  : (F_int, F_g)  wx_ref : (F_int, F_l)
    b_ref   : (F_int, 1)    pre-summed bias (bg + bx)
    wpsi_ref: (F_int, 1)    bpsi_ref: (1, 1)
    out_ref : (4*F_l, tm)
    """
    f_l = wx_ref.shape[1]

    xbt = xbt_ref[...]                       # (4*F_l, tm)
    xs = xbt[:f_l, :]                        # stride-2 sample (offset (0, 0))

    # 1x1 convs on the MXU, f32 accumulation; biases pre-summed -> one add.
    g1 = jnp.dot(wg_ref[...], gt_ref[...], preferred_element_type=jnp.float32)
    x1 = jnp.dot(wx_ref[...], xs, preferred_element_type=jnp.float32)
    a = jnp.maximum(g1 + x1 + b_ref[...], 0.0)           # (F_int, tm)

    # psi: F_int -> 1 conv as a sublane (XLU) reduction, then sigmoid (EUP).
    logit = jnp.sum(a * wpsi_ref[...], axis=0, keepdims=True) + bpsi_ref[...]
    psi = jax.nn.sigmoid(logit)                           # (1, tm)

    # x * Upsample(psi): all 4*F_l rows (the 2x2 fine block, every channel) of
    # a column share that column's gate -> sublane broadcast, lane-dense
    # unmasked store.  f32 compute, explicit cast on store (bf16-I/O safe).
    out_ref[...] = (xbt * psi).astype(out_ref.dtype)


def attention_block_pallas(g, x, params, *, tm=2048):
    """Forward pass of AttentionBlock. NCHW in, NCHW out.

    tm = number of coarse spatial positions per grid step (lane-tile width).
    Default 2048 targets v5e/v6e (128 MiB VMEM); with very wide U-Net channels
    (F_l ~ 256+) cap tm at ~512-1024 on v7x (64 MiB VMEM).  The scoped-VMEM
    limit is raised explicitly below; tm is also clamped to the problem size
    so tiny inputs don't pad wastefully.
    """
    wg, bg, wx, bx, wpsi, bpsi = params
    n, f_g, h, w = g.shape
    _, f_l, h2, w2 = x.shape
    assert h2 == 2 * h and w2 == 2 * w
    f_int = wg.shape[1]
    m = n * h * w

    # ---- re-layout to lane-dense [C, M] ------------------------------------
    gt = jnp.transpose(g, (1, 0, 2, 3)).reshape(f_g, m)            # (F_g, M)
    xbt = (x.reshape(n, f_l, h, 2, w, 2)
            .transpose(3, 5, 1, 0, 2, 4)                # (dh, dw, c, n, h, w)
            .reshape(4 * f_l, m))                                  # (4F_l, M)

    # Clamp the lane-tile to the (128-rounded) problem size, keep it a
    # multiple of 128, and pad M up to a whole number of tiles.
    tm = max(128, min(_round_up(tm, 128), _round_up(m, 128)))
    m_pad = _round_up(m, tm)
    if m_pad != m:
        gt = jnp.pad(gt, ((0, 0), (0, m_pad - m)))
        xbt = jnp.pad(xbt, ((0, 0), (0, m_pad - m)))

    # Parameters in kernel layout (tiny, fetched once).
    wg_t = wg.T                                  # (F_int, F_g)
    wx_t = wx.T                                  # (F_int, F_l)
    b_sum = (bg + bx).reshape(f_int, 1)          # fused bias
    wpsi_c = wpsi.reshape(f_int, 1)
    bpsi_c = bpsi.reshape(1, 1)

    grid = (m_pad // tm,)
    full = lambda i: (0, 0)
    lane_tile = lambda i: (0, i)

    out_t = pl.pallas_call(
        _attention_kernel,
        out_shape=jax.ShapeDtypeStruct((4 * f_l, m_pad), x.dtype),
        grid_spec=pltpu.PrefetchScalarGridSpec(
            num_scalar_prefetch=0,
            grid=grid,
            in_specs=[
                pl.BlockSpec((f_g, tm), lane_tile),
                pl.BlockSpec((4 * f_l, tm), lane_tile),
                pl.BlockSpec((f_int, f_g), full),
                pl.BlockSpec((f_int, f_l), full),
                pl.BlockSpec((f_int, 1), full),
                pl.BlockSpec((f_int, 1), full),
                pl.BlockSpec((1, 1), full),
            ],
            out_specs=pl.BlockSpec((4 * f_l, tm), lane_tile),
        ),
        compiler_params=pltpu.CompilerParams(
            # "parallel" lets the grid shard across the 2 TensorCores on v7x
            # when m_pad//tm >= 2 (no effect on v5e/v6e).
            dimension_semantics=("parallel",),
            # Raise the scoped-VMEM limit above the 16/32 MiB defaults so the
            # double-buffered 2048-lane tiles fit; 48 MiB is safely below the
            # physical VMEM of every generation (v7x has 64 MiB).
            vmem_limit_bytes=48 * 1024 * 1024,
        ),
    )(gt, xbt, wg_t, wx_t, b_sum, wpsi_c, bpsi_c)

    # ---- invert the layout back to NCHW ------------------------------------
    out_t = out_t[:, :m]
    out = (out_t.reshape(2, 2, f_l, n, h, w)
                .transpose(3, 2, 4, 0, 5, 1)              # (n, c, h, dh, w, dw)
                .reshape(n, f_l, 2 * h, 2 * w))
    return out


def attention_block_ref(g, x, params):
    """Pure-JAX reference matching the PyTorch forward exactly."""
    wg, bg, wx, bx, wpsi, bpsi = params
    g1 = jnp.einsum('nchw,co->nohw', g, wg) + bg[None, :, None, None]
    xs = x[:, :, ::2, ::2]                                 # kernel 1, stride 2
    x1 = jnp.einsum('nchw,co->nohw', xs, wx) + bx[None, :, None, None]
    a = jnp.maximum(g1 + x1, 0.0)
    psi = jax.nn.sigmoid(jnp.einsum('nchw,c->nhw', a, wpsi) + bpsi)[:, None]
    psi_up = jnp.repeat(jnp.repeat(psi, 2, axis=2), 2, axis=3)   # nearest x2
    return x * psi_up


if __name__ == "__main__":
    # Small shapes: F_g = F_l = 4, F_int = 8, dim = 2
    # x: [2, 4, 16, 16] (fine), g: [2, 4, 8, 8] (coarse = half spatial).
    N, F_g, F_l, F_int = 2, 4, 4, 8
    H = W = 8

    key = jax.random.PRNGKey(0)
    ks = jax.random.split(key, 8)
    g = jax.random.normal(ks[0], (N, F_g, H, W), jnp.float32)
    x = jax.random.normal(ks[1], (N, F_l, 2 * H, 2 * W), jnp.float32)

    # PyTorch Conv weights [out, in, 1, 1] stored here as [in, out] matrices.
    wg = jax.random.normal(ks[2], (F_g, F_int), jnp.float32) * 0.2
    bg = jax.random.normal(ks[3], (F_int,), jnp.float32) * 0.1
    wx = jax.random.normal(ks[4], (F_l, F_int), jnp.float32) * 0.2
    bx = jax.random.normal(ks[5], (F_int,), jnp.float32) * 0.1
    wpsi = jax.random.normal(ks[6], (F_int,), jnp.float32) * 0.2
    bpsi = jax.random.normal(ks[7], (), jnp.float32) * 0.1
    params = (wg, bg, wx, bx, wpsi, bpsi)

    out = attention_block_pallas(g, x, params)
    out = jax.block_until_ready(out)

    ref = attention_block_ref(g, x, params)
    np.testing.assert_allclose(np.asarray(out), np.asarray(ref), rtol=1e-5, atol=1e-5)
    assert out.shape == x.shape and out.dtype == x.dtype

    print("KERNEL_OK")
</pallas_src>

<mosaic_0001>
module attributes {stable_mosaic.version = 11 : i64} {
  func.func @_attention_kernel(%arg0: i32, %arg1: memref<4x128xf32, #tpu.memory_space<vmem>>, %arg2: memref<16x128xf32, #tpu.memory_space<vmem>>, %arg3: memref<8x4xf32, #tpu.memory_space<vmem>>, %arg4: memref<8x4xf32, #tpu.memory_space<vmem>>, %arg5: memref<8x1xf32, #tpu.memory_space<vmem>>, %arg6: memref<8x1xf32, #tpu.memory_space<vmem>>, %arg7: memref<1x1xf32, #tpu.memory_space<vmem>>, %arg8: memref<16x128xf32, #tpu.memory_space<vmem>>) attributes {dimension_semantics = [#tpu.dimension_semantics<parallel>], iteration_bounds = array<i64: 1>, scalar_prefetch = 0 : i64, scratch_operands = 0 : i64, tpu.core_type = #tpu.core_type<tc>, window_params = [{transform_indices = @transform_0, window_bounds = array<i64: 4, 128>}, {transform_indices = @transform_1, window_bounds = array<i64: 16, 128>}, {pipeline_mode = #tpu.pipeline_mode<synchronous>, transform_indices = @transform_2, window_bounds = array<i64: 8, 4>}, {pipeline_mode = #tpu.pipeline_mode<synchronous>, transform_indices = @transform_3, window_bounds = array<i64: 8, 4>}, {pipeline_mode = #tpu.pipeline_mode<synchronous>, transform_indices = @transform_4, window_bounds = array<i64: 8, 1>}, {pipeline_mode = #tpu.pipeline_mode<synchronous>, transform_indices = @transform_5, window_bounds = array<i64: 8, 1>}, {pipeline_mode = #tpu.pipeline_mode<synchronous>, transform_indices = @transform_6, window_bounds = array<i64: 1, 1>}, {transform_indices = @transform_7, window_bounds = array<i64: 16, 128>}]} {
    %c0 = arith.constant 0 : index
    %c0_0 = arith.constant 0 : index
    %0 = vector.load %arg2[%c0, %c0_0] : memref<16x128xf32, #tpu.memory_space<vmem>>, vector<16x128xf32>
    %1 = vector.extract_strided_slice %0 {offsets = [0, 0], sizes = [4, 128], strides = [1, 1]} : vector<16x128xf32> to vector<4x128xf32>
    %c0_1 = arith.constant 0 : index
    %c0_2 = arith.constant 0 : index
    %2 = vector.load %arg3[%c0_1, %c0_2] : memref<8x4xf32, #tpu.memory_space<vmem>>, vector<8x4xf32>
    %c0_3 = arith.constant 0 : index
    %c0_4 = arith.constant 0 : index
    %3 = vector.load %arg1[%c0_3, %c0_4] : memref<4x128xf32, #tpu.memory_space<vmem>>, vector<4x128xf32>
    %cst = arith.constant dense<0.000000e+00> : vector<8x128xf32>
    %4 = tpu.matmul %2, %3, %cst {dimension_numbers = #tpu.dot_dimension_numbers<[1], [0], [0], [1], [0, 0, 1, 1], [], []>} : vector<8x4xf32>, vector<4x128xf32>, vector<8x128xf32> -> vector<8x128xf32>
    %c0_5 = arith.constant 0 : index
    %c0_6 = arith.constant 0 : index
    %5 = vector.load %arg4[%c0_5, %c0_6] : memref<8x4xf32, #tpu.memory_space<vmem>>, vector<8x4xf32>
    %cst_7 = arith.constant dense<0.000000e+00> : vector<8x128xf32>
    %6 = tpu.matmul %5, %1, %cst_7 {dimension_numbers = #tpu.dot_dimension_numbers<[1], [0], [0], [1], [0, 0, 1, 1], [], []>} : vector<8x4xf32>, vector<4x128xf32>, vector<8x128xf32> -> vector<8x128xf32>
    %7 = arith.addf %4, %6 : vector<8x128xf32>
    %c0_8 = arith.constant 0 : index
    %c0_9 = arith.constant 0 : index
    %8 = vector.load %arg5[%c0_8, %c0_9] : memref<8x1xf32, #tpu.memory_space<vmem>>, vector<8x1xf32>
    %9 = vector.broadcast %8 : vector<8x1xf32> to vector<8x128xf32>
    %10 = arith.addf %7, %9 : vector<8x128xf32>
    %cst_10 = arith.constant 0.000000e+00 : f32
    %11 = vector.broadcast %cst_10 : f32 to vector<8x128xf32>
    %12 = arith.maximumf %10, %11 : vector<8x128xf32>
    %c0_11 = arith.constant 0 : index
    %c0_12 = arith.constant 0 : index
    %13 = vector.load %arg6[%c0_11, %c0_12] : memref<8x1xf32, #tpu.memory_space<vmem>>, vector<8x1xf32>
    %14 = vector.broadcast %13 : vector<8x1xf32> to vector<8x128xf32>
    %15 = arith.mulf %12, %14 : vector<8x128xf32>
    %cst_13 = arith.constant dense<0.000000e+00> : vector<128xf32>
    %16 = vector.multi_reduction <add>, %15, %cst_13 [0] : vector<8x128xf32> to vector<128xf32>
    %17 = vector.shape_cast %16 : vector<128xf32> to vector<1x128xf32>
    %c0_14 = arith.constant 0 : index
    %c0_15 = arith.constant 0 : index
    %18 = vector.load %arg7[%c0_14, %c0_15] : memref<1x1xf32, #tpu.memory_space<vmem>>, vector<1x1xf32>
    %19 = vector.broadcast %18 : vector<1x1xf32> to vector<1x128xf32>
    %20 = arith.addf %17, %19 : vector<1x128xf32>
    %21 = arith.negf %20 : vector<1x128xf32>
    %22 = math.exp %21 : vector<1x128xf32>
    %cst_16 = arith.constant 1.000000e+00 : f32
    %23 = vector.broadcast %cst_16 : f32 to vector<1x128xf32>
    %24 = arith.addf %23, %22 : vector<1x128xf32>
    %25 = arith.divf %23, %24 : vector<1x128xf32>
    %26 = vector.broadcast %25 : vector<1x128xf32> to vector<16x128xf32>
    %27 = arith.mulf %0, %26 : vector<16x128xf32>
    %c0_17 = arith.constant 0 : index
    %c0_18 = arith.constant 0 : index
    %28 = vector.load %arg8[%c0_17, %c0_18] : memref<16x128xf32, #tpu.memory_space<vmem>>, vector<16x128xf32>
    tpu.vector_store %arg8[%c0_17, %c0_18], %27 {strides = array<i32>} : memref<16x128xf32, #tpu.memory_space<vmem>>, vector<16x128xf32>,
    return
  }
  func.func @transform_0(%arg0: i32) -> (i32, i32) {
    %c0_i32 = arith.constant 0 : i32
    %c0_i32_0 = arith.constant 0 : i32
    return %c0_i32, %arg0 : i32, i32
  }
  func.func @transform_1(%arg0: i32) -> (i32, i32) {
    %c0_i32 = arith.constant 0 : i32
    %c0_i32_0 = arith.constant 0 : i32
    return %c0_i32, %arg0 : i32, i32
  }
  func.func @transform_2(%arg0: i32) -> (i32, i32) {
    %c0_i32 = arith.constant 0 : i32
    %c0_i32_0 = arith.constant 0 : i32
    %c0_i32_1 = arith.constant 0 : i32
    return %c0_i32, %c0_i32_0 : i32, i32
  }
  func.func @transform_3(%arg0: i32) -> (i32, i32) {
    %c0_i32 = arith.constant 0 : i32
    %c0_i32_0 = arith.constant 0 : i32
    %c0_i32_1 = arith.constant 0 : i32
    return %c0_i32, %c0_i32_0 : i32, i32
  }
  func.func @transform_4(%arg0: i32) -> (i32, i32) {
    %c0_i32 = arith.constant 0 : i32
    %c0_i32_0 = arith.constant 0 : i32
    %c0_i32_1 = arith.constant 0 : i32
    return %c0_i32, %c0_i32_0 : i32, i32
  }
  func.func @transform_5(%arg0: i32) -> (i32, i32) {
    %c0_i32 = arith.constant 0 : i32
    %c0_i32_0 = arith.constant 0 : i32
    %c0_i32_1 = arith.constant 0 : i32
    return %c0_i32, %c0_i32_0 : i32, i32
  }
  func.func @transform_6(%arg0: i32) -> (i32, i32) {
    %c0_i32 = arith.constant 0 : i32
    %c0_i32_0 = arith.constant 0 : i32
    %c0_i32_1 = arith.constant 0 : i32
    return %c0_i32, %c0_i32_0 : i32, i32
  }
  func.func @transform_7(%arg0: i32) -> (i32, i32) {
    %c0_i32 = arith.constant 0 : i32
    %c0_i32_0 = arith.constant 0 : i32
    return %c0_i32, %arg0 : i32, i32
  }
}

</mosaic_0001>

<bundles_post_ra>
// kernel: tpu_custom_call.1
= control target key start
LH: loop header
LB: loop body
LE: loop exit
PB: predicated region body
PF: predicated region fallthrough
CT: control target
= control target key end

     0   :  { %s270_s0 = inlined_call_operand.vmem [shape: f32[4,128], index: 0, kind: input, shape index: {}]   ;;  %s271_s1 = inlined_call_operand.vmem [shape: f32[16,128], index: 1, kind: input, shape index: {}]   ;;  %s272_s2 = inlined_call_operand.vmem [shape: f32[8,4], index: 2, kind: input, shape index: {}]   ;;  %s273_s3 = inlined_call_operand.vmem [shape: f32[8,4], index: 3, kind: input, shape index: {}]   ;;  %s274_s4 = inlined_call_operand.vmem [shape: f32[8,1], index: 4, kind: input, shape index: {}]   ;;  %s275_s5 = inlined_call_operand.vmem [shape: f32[8,1], index: 5, kind: input, shape index: {}]   ;;  %s276_s6 = inlined_call_operand.<no memory space> [shape: f32[1,1], index: 6, kind: input, shape index: {}]   ;;  %s277_s7 = inlined_call_operand.hbm [shape: f32[16,128], index: 7, kind: output, shape index: {}]  }
   0x1   :  { %v12_v0 = vstv %s276_s6 }
   0x2   :  { %13 = vst [vmem:[#allocation2] sm:$0x1] %v12_v0 }
   0x3   :  { %v29_v1 = vld [vmem:[%s271_s1] sm:$0xff]  ;;  %vm38_vm0 = vcmask 1043456   ;;  %vm34_vm1 = vcmask 31744   ;;  %v199_v6 = vmov 0  }
   0x4   :  { %v32_v2 = vld [vmem:[%s270_s0] sm:$0xf]  ;;  %158 = vmatpush.msk.msra.mxu0 %vm38_vm0, %v29_v1  ;;  %167 = vset.pattern.permute.xlu0 %v199_v6 }
   0x5   :  { %v33_v3 = vld [vmem:[%s273_s3] sm:$0xff]  ;;  %160 = vmatpush.msk.msra.mxu1 %vm38_vm0, %v32_v2 }
   0x6   :  { %v31_v4 = vld [vmem:[%s272_s2] sm:$0xff]  ;;  %159 = vmatmul.msk.f32.vlgmr.msra.gmra.mxu0 %vm34_vm1, %v33_v3 }
   0x7   :  { %v88_v5 = vld [vmem:[%s274_s4] sm:$0xff] }
   0x9   :  { %v109_v7 = vld [vmem:[#allocation2] sm:$0x1] }
   0xa   :  { %14 = vsyncpa [#allocation4], 0  ;;  %161 = vmatmul.msk.f32.vlgmr.msra.gmra.mxu1 %vm34_vm1, %v31_v4  ;;  %91 = vperm.xlu0 %167, %v88_v5   ;;  %v96_v8 = vld [vmem:[%s275_s5] sm:$0xff]  ;;  %v30_v37 = vld [vmem:[%s271_s1 + $0x8] sm:$0xff]  ;;  %s200_s5 = smov [#allocation3]   ;;  %s146_s15 = sshll.u32 %s277_s7, 4  ;;  %s147_s15 = int_to_ptr.hbm [resolvable:$true] %s146_s15 }
   0xb   :  { %168 = vset.pattern.permute.xlu1 %v199_v6  ;;  %s144_s12 = sshll.u32 %s200_s5, 4  ;;  %s201_s16 = smov 128   ;;  %s145_s12 = int_to_ptr.vmem [resolvable:$true] %s144_s12 }
   0xc   :  { %112 = vperm.xlu1 %168, %v109_v7   ;;  %s202_s17 = smov 8  }
  0x12   :  { %99 = vperm.xlu0 %167, %v96_v8  }
  0x7c   :  { %v92_v9 = vpop.permute.xlu0 %91 }
  0x7e   :  { %v113_v20 = vpop.permute.xlu1 %112 }
  0x7f   :  { %v115_v23 = vperm.slane %v113_v20, 0 }
  0x83   :  { %v59_v10 = vpop.f32.mrf.mxu0 }
  0x84   :  { %v100_v15 = vpop.permute.xlu0 %99 }
  0x87   :  { %v85_v11 = vpop.f32.mrf.mxu1 }
  0x88   :  { %v86_v12 = vadd.f32 %v85_v11, %v59_v10 }
  0x8a   :  { %v94_v13 = vadd.f32 %v92_v9, %v86_v12 }
  0x8c   :  { %v95_v14 = vmax.f32 %v94_v13, 0.0 }
  0x8e   :  { %v102_v16 = vmul.f32 %v100_v15, %v95_v14 }
  0x90   :  { %v103_v17 = vrot.slane %v102_v16, 4 }
  0x92   :  { %v104_v18 = vadd.f32 %v103_v17, %v102_v16 }
  0x94   :  { %v105_v19 = vrot.slane %v104_v18, 2 }
  0x96   :  { %v106_v21 = vadd.f32 %v105_v19, %v104_v18 }
  0x98   :  { %v107_v22 = vrot.slane %v106_v21, 1 }
  0x9a   :  { %v108_v24 = vadd.f32 %v107_v22, %v106_v21 }
  0x9c   :  { %v116_v25 = vadd.f32 %v115_v23, %v108_v24 }
  0x9e   :  { %v162_v26 = vmul.f32 -1.442695, %v116_v25 }
  0xa0   :  { %169 = vpow2.f32 %v162_v26 }
  0xa6   :  { %v170_v27 = vpop.eup %169 }
  0xa7   :  { %v120_v28 = vadd.f32 1.0, %v170_v27 }
  0xa9   :  { %171 = vrcp.f32 %v120_v28  ;;  %v132_v32 = vand.u32 2147483648, %v120_v28  ;;  %v130_v34 = vand.u32 2147483647, %v120_v28  ;;  %vm126_vm3 = vweird.f32 %v120_v28 }
  0xab   :  { %v133_v36 = vor.u32 1.1754944e-38, %v132_v32  ;;  %vm131_vm5 = vcmp.eq.f32.partialorder %v130_v34, 8.507059e+37 }
  0xaf   :  { %v172_v29 = vpop.eup %171 }
  0xb0   :  { %v122_v30 = vmul.f32 %v172_v29, %v120_v28  ;;  %vm127_vm2 = vweird.f32 %v172_v29 }
  0xb1   :  { %vm128_vm4 = vmor %vm126_vm3, %vm127_vm2 }
  0xb2   :  { %v123_v31 = vsub.f32 1.0, %v122_v30 }
  0xb4   :  { %v124_v33 = vmul.f32 %v172_v29, %v123_v31 }
  0xb6   :  { %v125_v35 = vadd.f32 %v172_v29, %v124_v33 }
  0xb8   :  { %v129_v38 = vsel %vm128_vm4, %v172_v29, %v125_v35 }
  0xb9   :  { %v134_v39 = vsel %vm131_vm5, %v133_v36, %v129_v38 }
  0xba   :  { %v136_v40 = vmul.f32 %v134_v39, %v29_v1  ;;  %v137_v41 = vmul.f32 %v134_v39, %v30_v37 }
  0xbc   :  { %138 = vst [vmem:[#allocation3] sm:$0xff] %v136_v40 }
  0xbd   :  { %139 = vst [vmem:[#allocation3 + $0x8] sm:$0xff] %v137_v41 }
  0xbe   :  { %152 = dma.vmem_to_hbm [thread:$0]  %s145_s12, 256, %s147_s15, [#allocation4], %s201_s16, %s201_s16, %s202_s17  }
  0xbf   :  { %197 = dma.done.wait [#allocation4], 256  }
  0xc0   :  { %198 = vsyncadd [#allocation4], 4294967040 }
  0xc1   :  { %157 = vsyncpa [#allocation4], 1 }

</bundles_post_ra>
